<compile_context>
chip_gen: v6e
topology: v6e:2x2x1
jax: 0.10.0
libtpu: 0.0.40
codegen_flags: <defaults>
</compile_context>

<pallas_src>
import functools
import math

import jax
import jax.numpy as jnp
from jax import lax
from jax.experimental import pallas as pl
from jax.experimental.pallas import tpu as pltpu


def _round_up(x, m):
    return ((x + m - 1) // m) * m


def _vmem_capacity_bytes():
    try:
        return int(pltpu.get_tpu_info().vmem_capacity_bytes)
    except Exception:
        return 64 * 1024 * 1024  # conservative default (v7x per-core VMEM)


# Contract x tile (tm, tk) against the untransposed weight tile (tn, tk) along
# the embed axis; Mosaic feeds the MXU the transposed RHS.
_DIMS = (((1,), (1,)), ((), ()))

_TN_CANDS = (2048, 1536, 1024, 768, 512, 384, 256, 128)
_TK_CANDS = (4096, 2048, 1024, 512, 256, 128)


def _kernel_single_k(x_ref, w_ref, o_ref):
    # Whole reduction (embed) in one tile: write output directly, no
    # accumulator round-trip, no pl.when phases; x tile stays resident across
    # the entire vocab (j) sweep.
    o_ref[...] = lax.dot_general(
        x_ref[...], w_ref[...],
        dimension_numbers=_DIMS,
        preferred_element_type=jnp.float32,
    ).astype(o_ref.dtype)


def _kernel_multi_k(x_ref, w_ref, o_ref, acc_ref):
    @pl.when(pl.program_id(2) == 0)
    def _():
        acc_ref[...] = jnp.zeros_like(acc_ref)

    acc_ref[...] += lax.dot_general(
        x_ref[...], w_ref[...],
        dimension_numbers=_DIMS,
        preferred_element_type=jnp.float32,
    )

    @pl.when(pl.program_id(2) == pl.num_programs(2) - 1)
    def _():
        o_ref[...] = acc_ref[...].astype(o_ref.dtype)


def _weight_block_spec(shape, index_map, n_buffers):
    if n_buffers > 2:
        try:
            return pl.BlockSpec(shape, index_map, pipeline_mode=pl.Buffered(n_buffers))
        except Exception:
            pass  # pipeline_mode unsupported -> default double buffering
    return pl.BlockSpec(shape, index_map)


def _select_config(M, N, K, xb, wb, ob, budget):
    """Pick (tm, tn, tk, single_k, footprint) minimizing estimated HBM bytes."""
    # tm: small M keeps the whole x slab resident (block == full dim, legal
    # for any dtype); large M takes tall row tiles to cut weight re-streaming.
    if M <= 256:
        tm_cands = [M]
    else:
        base = (1024, 512, 256) if max(xb, wb) <= 2 else (512, 256)
        tm_cands = [t for t in base if t <= M] or [256]

    # tn: lane-dense widths; also allow tn == N so small/odd vocabs need no
    # padding and no output slice.
    tn_cands = sorted({c for c in _TN_CANDS if c <= N} |
                      ({N} if N <= 2048 else set()), reverse=True)
    if not tn_cands:
        tn_cands = [N]

    # tk: full-K (single pass over the reduction) first, then clean divisors.
    tk_cands = [(K, True)]
    if K % 128 == 0:
        tk_cands += [(t, False) for t in _TK_CANDS if t < K and K % t == 0]

    best = None
    for tm in tm_cands:
        for tk, single in tk_cands:
            for tn in tn_cands:
                fp = 2 * tm * tk * xb + 2 * tn * tk * wb + 2 * tm * tn * ob
                if not single:
                    fp += tm * tn * 4  # f32 accumulator scratch
                if fp > budget:
                    continue
                m_grid, n_grid = pl.cdiv(M, tm), pl.cdiv(N, tn)
                k_grid = 1 if single else K // tk
                x_streams = 1 if single else n_grid
                hbm = x_streams * M * K * xb + m_grid * N * K * wb + M * N * ob
                steps = m_grid * n_grid * k_grid
                key = (hbm, steps, 0 if single else 1, -tn)
                if best is None or key < best[0]:
                    best = (key, (tm, tn, tk, single, fp))
    if best is not None:
        return best[1]

    # Nothing fits the budget (enormous K with a tiny budget): smallest legal
    # multi-K tiling; caller pads K to a multiple of tk if needed.
    tm, tn = tm_cands[-1], tn_cands[-1]
    tk = min(512, _round_up(K, 128))
    single = tk >= K
    fp = (2 * tm * tk * xb + 2 * tn * tk * wb + 2 * tm * tn * ob
          + (0 if single else tm * tn * 4))
    return tm, tn, tk, single, fp


@functools.partial(jax.jit, static_argnames=("tm", "tn", "tk"))
def tied_embedding(x, weight, *, tm=None, tn=None, tk=None):
    """y = x @ weight.T  (TiedEmbedding.forward).

    x      : (bsz, ..., embed_size)
    weight : (vocab_size, embed_size)   -- used untransposed, never copied
    returns: (bsz, ..., vocab_size)
    """
    *lead, K = x.shape
    N, K_w = weight.shape
    if K != K_w:
        raise ValueError(f"embed_size mismatch: x has {K}, weight has {K_w}")
    M = math.prod(lead) if lead else 1

    out_dtype = jnp.result_type(x.dtype, weight.dtype)
    xb = jnp.dtype(x.dtype).itemsize
    wb = jnp.dtype(weight.dtype).itemsize
    ob = jnp.dtype(out_dtype).itemsize

    vmem_cap = _vmem_capacity_bytes()
    budget = int(vmem_cap * 0.75)

    a_tm, a_tn, a_tk, _, _ = _select_config(M, N, K, xb, wb, ob, budget)
    tm = a_tm if tm is None else min(tm, M)
    tn = a_tn if tn is None else min(tn, N)
    tk = a_tk if tk is None else min(tk, K)
    single = tk >= K

    x2d = x.reshape(M, K)
    w = weight
    K_eff = K
    if not single and K % tk != 0:
        # Rare path: reduction must be split but embed_size is not a multiple
        # of the K tile.  This zero-pad is a full HBM copy of the vocab table;
        # in a real model hoist it to init so it is paid once, not per call.
        K_eff = _round_up(K, tk)
        x2d = jnp.pad(x2d, ((0, 0), (0, K_eff - K)))
        w = jnp.pad(weight, ((0, 0), (0, K_eff - K)))

    m_grid = pl.cdiv(M, tm)
    n_grid = pl.cdiv(N, tn)
    k_tile = K_eff if single else tk

    # Double-buffered VMEM footprint (+ f32 accumulator in the multi-K path).
    n_w_buffers = 2
    fp = 2 * tm * k_tile * xb + n_w_buffers * tn * k_tile * wb + 2 * tm * tn * ob
    if not single:
        fp += tm * tn * 4
    # Memory-bound decode: a 3rd weight buffer hides DMA issue latency at step
    # boundaries while the HBM stream stays saturated (VMEM permitting).
    if single and m_grid == 1 and n_grid >= 3 and fp + tn * k_tile * wb <= budget:
        n_w_buffers = 3
        fp += tn * k_tile * wb

    vmem_limit = int(min(vmem_cap * 0.85, max(fp * 1.2, 32 * 1024 * 1024)))

    # Actual streamed bytes: weight is re-streamed once per LHS row-tile; x is
    # re-streamed per output column-tile only in the multi-K path.
    x_streams = 1 if single else n_grid
    cost = pl.CostEstimate(
        flops=2 * M * N * K,
        bytes_accessed=int(x_streams * M * K_eff * xb
                           + m_grid * N * K_eff * wb
                           + M * N * ob),
        transcendentals=0,
    )

    if single:
        kernel = _kernel_single_k
        grid = (m_grid, n_grid)
        in_specs = [
            pl.BlockSpec((tm, K_eff), lambda i, j: (i, 0)),
            _weight_block_spec((tn, K_eff), lambda i, j: (j, 0), n_w_buffers),
        ]
        out_specs = pl.BlockSpec((tm, tn), lambda i, j: (i, j))
        scratch = ()
        dim_sem = ("parallel", "parallel")
    else:
        kernel = _kernel_multi_k
        grid = (m_grid, n_grid, K_eff // tk)
        in_specs = [
            pl.BlockSpec((tm, tk), lambda i, j, k: (i, k)),
            pl.BlockSpec((tn, tk), lambda i, j, k: (j, k)),
        ]
        out_specs = pl.BlockSpec((tm, tn), lambda i, j, k: (i, j))
        scratch = (pltpu.VMEM((tm, tn), jnp.float32),)
        dim_sem = ("parallel", "parallel", "arbitrary")

    out2d = pl.pallas_call(
        kernel,
        out_shape=jax.ShapeDtypeStruct((M, N), out_dtype),
        grid_spec=pltpu.PrefetchScalarGridSpec(
            num_scalar_prefetch=0,
            grid=grid,
            in_specs=in_specs,
            out_specs=out_specs,
            scratch_shapes=scratch,
        ),
        compiler_params=pltpu.CompilerParams(
            dimension_semantics=dim_sem,
            vmem_limit_bytes=vmem_limit,
        ),
        cost_estimate=cost,
    )(x2d, w)

    return out2d.reshape(*lead, N)


if __name__ == "__main__":
    key = jax.random.PRNGKey(0)
    k1, k2, k3, k4, k5, k6 = jax.random.split(key, 6)

    def check(x, w, y, atol, rtol):
        ref = jnp.matmul(x.astype(jnp.float32), w.astype(jnp.float32).T,
                         precision=lax.Precision.HIGHEST)
        assert y.shape == ref.shape, (y.shape, ref.shape)
        err = float(jnp.max(jnp.abs(y.astype(jnp.float32) - ref)))
        assert jnp.allclose(y.astype(jnp.float32), ref, atol=atol, rtol=rtol), err

    # 1) Basic decode-ish case: single-K, whole x slab resident.
    bsz, seq, embed, vocab = 2, 8, 128, 256
    x = jax.random.normal(k1, (bsz, seq, embed), dtype=jnp.float32)
    w = jax.random.normal(k2, (vocab, embed), dtype=jnp.float32) * 0.02
    y = jax.block_until_ready(tied_embedding(x, w))
    check(x, w, y, 2e-3, 2e-3)

    # 2) Odd shapes (vocab / seq not multiples of 128 / 8): no pad, no slice.
    x2 = jax.random.normal(k3, (1, 5, embed), dtype=jnp.float32)
    w2 = jax.random.normal(k4, (300, embed), dtype=jnp.float32) * 0.02
    y2 = jax.block_until_ready(tied_embedding(x2, w2))
    check(x2, w2, y2, 2e-3, 2e-3)

    # 3) M > 256 (prefill-style path) with a ragged final row-tile.
    x3 = jax.random.normal(k5, (4, 65, embed), dtype=jnp.float32)
    y3 = jax.block_until_ready(tied_embedding(x3, w))
    check(x3, w, y3, 2e-3, 2e-3)

    # 4) Multi-K (split reduction) path, forced via the tk override.
    x4 = jax.random.normal(k6, (2, 4, 256), dtype=jnp.float32)
    w4 = jax.random.normal(k2, (384, 256), dtype=jnp.float32) * 0.02
    y4 = jax.block_until_ready(tied_embedding(x4, w4, tk=128))
    check(x4, w4, y4, 2e-3, 2e-3)

    # 5) bf16 activations / weights (bf16 MXU path, f32 accumulation).
    xb16 = x.astype(jnp.bfloat16)
    wb16 = w.astype(jnp.bfloat16)
    yb16 = jax.block_until_ready(tied_embedding(xb16, wb16))
    check(xb16, wb16, yb16, 3e-2, 3e-2)

    print("KERNEL_OK")
</pallas_src>

<mosaic_0001>
module attributes {stable_mosaic.version = 11 : i64} {
  func.func @_kernel_single_k(%arg0: i32, %arg1: i32, %arg2: memref<16x128xf32, #tpu.memory_space<vmem>>, %arg3: memref<256x128xf32, #tpu.memory_space<vmem>>, %arg4: memref<16x256xf32, #tpu.memory_space<vmem>>) attributes {dimension_semantics = [#tpu.dimension_semantics<parallel>, #tpu.dimension_semantics<parallel>], iteration_bounds = array<i64: 1, 1>, scalar_prefetch = 0 : i64, scratch_operands = 0 : i64, tpu.core_type = #tpu.core_type<tc>, window_params = [{transform_indices = @transform_0, window_bounds = array<i64: 16, 128>}, {transform_indices = @transform_1, window_bounds = array<i64: 256, 128>}, {transform_indices = @transform_2, window_bounds = array<i64: 16, 256>}]} {
    %c0 = arith.constant 0 : index
    %c0_0 = arith.constant 0 : index
    %0 = vector.load %arg2[%c0, %c0_0] : memref<16x128xf32, #tpu.memory_space<vmem>>, vector<16x128xf32>
    %c0_1 = arith.constant 0 : index
    %c0_2 = arith.constant 0 : index
    %1 = vector.load %arg3[%c0_1, %c0_2] : memref<256x128xf32, #tpu.memory_space<vmem>>, vector<256x128xf32>
    %cst = arith.constant dense<0.000000e+00> : vector<16x256xf32>
    %2 = tpu.matmul %0, %1, %cst {dimension_numbers = #tpu.dot_dimension_numbers<[1], [1], [0], [0], [0, 0, 1, 0], [], []>} : vector<16x128xf32>, vector<256x128xf32>, vector<16x256xf32> -> vector<16x256xf32>
    %c0_3 = arith.constant 0 : index
    %c0_4 = arith.constant 0 : index
    %3 = vector.load %arg4[%c0_3, %c0_4] : memref<16x256xf32, #tpu.memory_space<vmem>>, vector<16x256xf32>
    tpu.vector_store %arg4[%c0_3, %c0_4], %2 {strides = array<i32>} : memref<16x256xf32, #tpu.memory_space<vmem>>, vector<16x256xf32>,
    return
  }
  func.func @transform_0(%arg0: i32, %arg1: i32) -> (i32, i32) {
    %c0_i32 = arith.constant 0 : i32
    %c0_i32_0 = arith.constant 0 : i32
    return %arg0, %c0_i32 : i32, i32
  }
  func.func @transform_1(%arg0: i32, %arg1: i32) -> (i32, i32) {
    %c0_i32 = arith.constant 0 : i32
    %c0_i32_0 = arith.constant 0 : i32
    return %arg1, %c0_i32 : i32, i32
  }
  func.func @transform_2(%arg0: i32, %arg1: i32) -> (i32, i32) {
    %c0_i32 = arith.constant 0 : i32
    return %arg0, %arg1 : i32, i32
  }
}

</mosaic_0001>

<bundles_post_ra>
// kernel: tied_embedding.1
= control target key start
LH: loop header
LB: loop body
LE: loop exit
PB: predicated region body
PF: predicated region fallthrough
CT: control target
= control target key end

     0   :  { %7 = vsyncpa [#allocation3], 0  ;;  %s353_s0 = inlined_call_operand.hbm [shape: f32[16,128], index: 0, kind: input, shape index: {}]   ;;  %s354_s1 = inlined_call_operand.hbm [shape: f32[256,128], index: 1, kind: input, shape index: {}]   ;;  %s355_s2 = inlined_call_operand.hbm [shape: f32[16,256], index: 2, kind: output, shape index: {}]  }
   0x1   :  { %8 = vsyncpa [#allocation6], 0 }
   0x2   :  { %9 = vsyncpa [#allocation4], 0  ;;  %s314_s9 = smov [#allocation2]  }
   0x3   :  { %s15_s10 = sshll.u32 %s314_s9, 4  ;;  %s16_s10 = int_to_ptr.vmem [resolvable:$true] %s15_s10 }
   0x4   :  { %s256_s11 = scalar_lea.vmem %s16_s10, 256  ;;  %p261_p1 = scmp.lt.s32.totalorder %s16_s10, %s16_s10 }
   0x5   :  { %p257_p0 = scmp.ne.s32.totalorder %s16_s10, %s256_s11  ;;  %p262_p2 = scmp.lt.s32.totalorder %s256_s11, %s256_s11 }
   0x7   :  { %p263_p3 = por %p262_p2, %p261_p1 }
   0x9   :  { %p264_p4 = pnand %p263_p3, %p257_p0 }
   0xb   :  { %267 = shalt.err (!%p264_p4)
}
   0xc   :  { %s315_s12 = smov 128   ;;  %s316_s13 = smov 8  }
   0xd   :  { %21 = dma.hbm_to_vmem [thread:$0]  %s353_s0, 256, %s16_s10, [#allocation3], %s315_s12, %s315_s12, %s316_s13  }
   0xe   :  { %s317_s16 = smov [#allocation5]  }
   0xf   :  { %s27_s17 = sshll.u32 %s317_s16, 4  ;;  %s28_s17 = int_to_ptr.vmem [resolvable:$true] %s27_s17 }
  0x10   :  { %s276_s18 = scalar_lea.vmem %s28_s17, 4096  ;;  %p281_p6 = scmp.lt.s32.totalorder %s28_s17, %s28_s17 }
  0x11   :  { %p277_p5 = scmp.ne.s32.totalorder %s28_s17, %s276_s18  ;;  %p282_p7 = scmp.lt.s32.totalorder %s276_s18, %s276_s18 }
  0x13   :  { %p283_p8 = por %p282_p7, %p281_p6 }
  0x15   :  { %p284_p9 = pnand %p283_p8, %p277_p5 }
  0x17   :  { %287 = shalt.err (!%p284_p9)
}
  0x18   :  { %33 = dma.hbm_to_vmem [thread:$0]  %s354_s1, 4096, %s28_s17, [#allocation6], %s315_s12, %s315_s12, %s316_s13  }
  0x19   :  { %308 = dma.done.wait [#allocation3], 256  }
  0x1a   :  { %309 = vsyncadd [#allocation3], 4294967040 }
  0x1b   :  { %310 = dma.done.wait [#allocation6], 4096  }
  0x1c   :  { %311 = vsyncadd [#allocation6], 4294963200  ;;  %v73_v0 = vld [vmem:[#allocation5 + $0xf8] sm:$0xff]  ;;  %v72_v2 = vld [vmem:[#allocation5 + $0xf0] sm:$0xff]  ;;  %s318_s0 = smov [#allocation7]  }
  0x1d   :  { %v57_v1 = vld [vmem:[#allocation5 + $0x78] sm:$0xff]  ;;  %173 = vmatprep.subr.mxu0 %v73_v0  ;;  %209 = vmatprep.subr.mxu1 %v73_v0  ;;  %v56_v3 = vld [vmem:[#allocation5 + $0x70] sm:$0xff]  ;;  %v71_v4 = vld [vmem:[#allocation5 + $0xe8] sm:$0xff]  ;;  %s160_s1 = sshll.u32 %s318_s0, 4  ;;  %s161_s1 = int_to_ptr.vmem [resolvable:$true] %s160_s1 }
  0x1e   :  { %174 = vmatpush3.xpose.msra.mxu0 %v57_v1  ;;  %225 = vmatpush3.xpose.msra.mxu1 %v57_v1  ;;  %v55_v5 = vld [vmem:[#allocation5 + $0x68] sm:$0xff]  ;;  %v70_v6 = vld [vmem:[#allocation5 + $0xe0] sm:$0xff]  ;;  %v342_v7 = vld [vmem:[#allocation2] sm:$0xff]  ;;  %s288_s21 = scalar_lea.vmem %s161_s1, 512  ;;  %p293_p11 = scmp.lt.s32.totalorder %s161_s1, %s161_s1 }
  0x1f   :  { %175 = vmatprep.subr.mxu0 %v72_v2  ;;  %210 = vmatprep.subr.mxu1 %v72_v2  ;;  %v54_v8 = vld [vmem:[#allocation5 + $0x60] sm:$0xff]  ;;  %v344_v9 = vld [vmem:[#allocation2 + $0x8] sm:$0xff]  ;;  %v68_v12 = vld [vmem:[#allocation5 + $0xd0] sm:$0xff]  ;;  %p289_p10 = scmp.ne.s32.totalorder %s161_s1, %s288_s21  ;;  %p294_p12 = scmp.lt.s32.totalorder %s288_s21, %s288_s21 }
  0x20   :  { %v69_v10 = vld [vmem:[#allocation5 + $0xd8] sm:$0xff]  ;;  %205 = vmatprep.mubr.f32.mxu0 %v342_v7  ;;  %207 = vmatprep.mubr.f32.mxu1 %v344_v9  ;;  %v52_v13 = vld [vmem:[#allocation5 + $0x50] sm:$0xff]  ;;  %v67_v14 = vld [vmem:[#allocation5 + $0xc8] sm:$0xff] }
  0x21   :  { %v53_v11 = vld [vmem:[#allocation5 + $0x58] sm:$0xff]  ;;  %v51_v15 = vld [vmem:[#allocation5 + $0x48] sm:$0xff]  ;;  %v66_v16 = vld [vmem:[#allocation5 + $0xc0] sm:$0xff]  ;;  %p295_p13 = por %p294_p12, %p293_p11 }
  0x22   :  { %176 = vmatpush3.xpose.msra.mxu0 %v56_v3  ;;  %226 = vmatpush3.xpose.msra.mxu1 %v56_v3  ;;  %v50_v17 = vld [vmem:[#allocation5 + $0x40] sm:$0xff]  ;;  %v65_v18 = vld [vmem:[#allocation5 + $0xb8] sm:$0xff]  ;;  %v64_v20 = vld [vmem:[#allocation5 + $0xb0] sm:$0xff] }
  0x23   :  { %177 = vmatprep.subr.mxu0 %v71_v4  ;;  %211 = vmatprep.subr.mxu1 %v71_v4  ;;  %v49_v19 = vld [vmem:[#allocation5 + $0x38] sm:$0xff]  ;;  %v48_v21 = vld [vmem:[#allocation5 + $0x30] sm:$0xff]  ;;  %v63_v22 = vld [vmem:[#allocation5 + $0xa8] sm:$0xff]  ;;  %p296_p0 = pnand %p295_p13, %p289_p10 }
  0x24   :  { %v47_v23 = vld [vmem:[#allocation5 + $0x28] sm:$0xff]  ;;  %v62_v24 = vld [vmem:[#allocation5 + $0xa0] sm:$0xff]  ;;  %v61_v26 = vld [vmem:[#allocation5 + $0x98] sm:$0xff] }
  0x25   :  { %v46_v25 = vld [vmem:[#allocation5 + $0x20] sm:$0xff]  ;;  %v45_v27 = vld [vmem:[#allocation5 + $0x18] sm:$0xff]  ;;  %v60_v28 = vld [vmem:[#allocation5 + $0x90] sm:$0xff] }
  0x26   :  { %178 = vmatpush3.xpose.msra.mxu0 %v55_v5  ;;  %227 = vmatpush3.xpose.msra.mxu1 %v55_v5  ;;  %v44_v29 = vld [vmem:[#allocation5 + $0x10] sm:$0xff]  ;;  %v59_v30 = vld [vmem:[#allocation5 + $0x88] sm:$0xff]  ;;  %v58_v32 = vld [vmem:[#allocation5 + $0x80] sm:$0xff] }
  0x27   :  { %179 = vmatprep.subr.mxu0 %v70_v6  ;;  %212 = vmatprep.subr.mxu1 %v70_v6  ;;  %v43_v31 = vld [vmem:[#allocation5 + $0x8] sm:$0xff]  ;;  %v42_v33 = vld [vmem:[#allocation5] sm:$0xff] }
  0x2a   :  { %180 = vmatpush3.xpose.msra.mxu0 %v54_v8  ;;  %228 = vmatpush3.xpose.msra.mxu1 %v54_v8 }
  0x2b   :  { %181 = vmatprep.subr.mxu0 %v69_v10  ;;  %213 = vmatprep.subr.mxu1 %v69_v10 }
  0x2e   :  { %182 = vmatpush3.xpose.msra.mxu0 %v53_v11  ;;  %229 = vmatpush3.xpose.msra.mxu1 %v53_v11 }
  0x2f   :  { %183 = vmatprep.subr.mxu0 %v68_v12  ;;  %214 = vmatprep.subr.mxu1 %v68_v12 }
  0x32   :  { %184 = vmatpush3.xpose.msra.mxu0 %v52_v13  ;;  %230 = vmatpush3.xpose.msra.mxu1 %v52_v13 }
  0x33   :  { %185 = vmatprep.subr.mxu0 %v67_v14  ;;  %215 = vmatprep.subr.mxu1 %v67_v14 }
  0x36   :  { %186 = vmatpush3.xpose.msra.mxu0 %v51_v15  ;;  %231 = vmatpush3.xpose.msra.mxu1 %v51_v15 }
  0x37   :  { %187 = vmatprep.subr.mxu0 %v66_v16  ;;  %216 = vmatprep.subr.mxu1 %v66_v16 }
  0x3a   :  { %188 = vmatpush3.xpose.msra.mxu0 %v50_v17  ;;  %232 = vmatpush3.xpose.msra.mxu1 %v50_v17 }
  0x3b   :  { %189 = vmatprep.subr.mxu0 %v65_v18  ;;  %217 = vmatprep.subr.mxu1 %v65_v18 }
  0x3e   :  { %190 = vmatpush3.xpose.msra.mxu0 %v49_v19  ;;  %233 = vmatpush3.xpose.msra.mxu1 %v49_v19 }
  0x3f   :  { %191 = vmatprep.subr.mxu0 %v64_v20  ;;  %218 = vmatprep.subr.mxu1 %v64_v20 }
  0x42   :  { %192 = vmatpush3.xpose.msra.mxu0 %v48_v21  ;;  %234 = vmatpush3.xpose.msra.mxu1 %v48_v21 }
  0x43   :  { %193 = vmatprep.subr.mxu0 %v63_v22  ;;  %219 = vmatprep.subr.mxu1 %v63_v22 }
  0x46   :  { %194 = vmatpush3.xpose.msra.mxu0 %v47_v23  ;;  %235 = vmatpush3.xpose.msra.mxu1 %v47_v23 }
  0x47   :  { %195 = vmatprep.subr.mxu0 %v62_v24  ;;  %220 = vmatprep.subr.mxu1 %v62_v24 }
  0x4a   :  { %196 = vmatpush3.xpose.msra.mxu0 %v46_v25  ;;  %236 = vmatpush3.xpose.msra.mxu1 %v46_v25 }
  0x4b   :  { %197 = vmatprep.subr.mxu0 %v61_v26  ;;  %221 = vmatprep.subr.mxu1 %v61_v26 }
  0x4e   :  { %198 = vmatpush3.xpose.msra.mxu0 %v45_v27  ;;  %237 = vmatpush3.xpose.msra.mxu1 %v45_v27 }
  0x4f   :  { %199 = vmatprep.subr.mxu0 %v60_v28  ;;  %222 = vmatprep.subr.mxu1 %v60_v28 }
  0x52   :  { %200 = vmatpush3.xpose.msra.mxu0 %v44_v29  ;;  %238 = vmatpush3.xpose.msra.mxu1 %v44_v29 }
  0x53   :  { %201 = vmatprep.subr.mxu0 %v59_v30  ;;  %223 = vmatprep.subr.mxu1 %v59_v30 }
  0x56   :  { %202 = vmatpush3.xpose.msra.mxu0 %v43_v31  ;;  %239 = vmatpush3.xpose.msra.mxu1 %v43_v31 }
  0x57   :  { %203 = vmatprep.subr.mxu0 %v58_v32  ;;  %224 = vmatprep.subr.mxu1 %v58_v32 }
  0x5a   :  { %204 = vmatpush3.xpose.msra.mxu0 %v42_v33  ;;  %240 = vmatpush3.xpose.msra.mxu1 %v42_v33 }
  0x5d   :  { %206 = vmatmul.mubr.f32.vlgmr.msra.gmra.mxu0 %v342_v7  ;;  %208 = vmatmul.mubr.f32.vlgmr.msra.gmra.mxu1 %v344_v9 }
 0x11d   :  { %v140_v34 = vpop.f32.mrf.mxu0  ;;  %v146_v35 = vpop.f32.mrf.mxu1 }
 0x11e   :  { %151 = vst [vmem:[#allocation7] sm:$0xff] %v140_v34  ;;  %153 = vst [vmem:[#allocation7 + $0x10] sm:$0xff] %v146_v35 }
 0x11f   :  { %v142_v36 = vpop.f32.mrf.mxu0  ;;  %v148_v37 = vpop.f32.mrf.mxu1 }
 0x120   :  { %152 = vst [vmem:[#allocation7 + $0x8] sm:$0xff] %v142_v36  ;;  %154 = vst [vmem:[#allocation7 + $0x18] sm:$0xff] %v148_v37 }
 0x121   :  { %299 = shalt.err (!%p296_p0)
}
 0x122   :  { %s319_s22 = smov 256   ;;  %s320_s23 = smov 16  }
 0x123   :  { %166 = dma.vmem_to_hbm [thread:$0]  %s161_s1, 512, %s355_s2, [#allocation4], %s319_s22, %s319_s22, %s320_s23  }
 0x124   :  { %312 = dma.done.wait [#allocation4], 512  }
 0x125   :  { %313 = vsyncadd [#allocation4], 4294966784 }
 0x126   :  { %170 = vsyncpa [#allocation3], 1 }
 0x127   :  { %171 = vsyncpa [#allocation6], 1 }
 0x128   :  { %172 = vsyncpa [#allocation4], 1 }

</bundles_post_ra>
